<compile_context>
chip_gen: v7x
topology: tpu7x:2x2x1
jax: 0.10.0
libtpu: 0.0.40
codegen_flags: <defaults>
</compile_context>

<pallas_src>
import functools

import jax
import jax.numpy as jnp
from jax import lax
from jax.experimental import pallas as pl
from jax.experimental.pallas import tpu as pltpu

_LN_EPS = 1e-5
_SLOPE = 0.2


def _round_up(n, m):
    return ((n + m - 1) // m) * m


def _leaky(v):
    # LeakyReLU(0.2) == max(v, 0.2*v) for slope < 1.
    return jnp.maximum(v, _SLOPE * v)


def _ln_zero_padded(y, n_true, gamma, beta):
    """LayerNorm over the first n_true lanes of y.

    Valid when padded lanes of y / gamma / beta are exactly zero: the padded
    lanes then drop out of both sums and the padded outputs stay zero.
    """
    inv_n = 1.0 / float(n_true)
    mean = jnp.sum(y, axis=-1, keepdims=True) * inv_n
    var = jnp.sum(y * y, axis=-1, keepdims=True) * inv_n - mean * mean
    inv = lax.rsqrt(jnp.maximum(var, 0.0) + _LN_EPS)
    return (y - mean) * inv * gamma + beta


def _gen_kernel(x_ref, w0_ref, w1_ref, wbr_ref, wbd_ref, vd_ref, vn_ref, o_ref,
                *, d, h, hl, n_pad):
    cdt = w0_ref.dtype                       # matmul input/storage dtype
    x_st = x_ref[...]                        # storage dtype (bf16 or f32)
    x_f32 = x_st.astype(jnp.float32)         # only needed for the residual add

    vd = vd_ref[...]                         # (8, Dp) packed f32 vectors
    vn = vn_ref[...]                         # (8, Np) packed f32 vectors

    # ---- residual block 0 ----------------------------------------------
    y = jnp.dot(x_st.astype(cdt), w0_ref[...], preferred_element_type=jnp.float32)
    y = _ln_zero_padded(y + vd[0:1, :], d, vd[1:2, :], vd[2:3, :])
    hcur = _leaky(y) + x_f32

    # ---- residual block 1 ----------------------------------------------
    y = jnp.dot(hcur.astype(cdt), w1_ref[...], preferred_element_type=jnp.float32)
    y = _ln_zero_padded(y + vd[3:4, :], d, vd[4:5, :], vd[5:6, :])
    hcur = _leaky(y) + hcur

    # ---- fused branch stage 1: one matmul producing [block_2 | block_3] --
    y = jnp.dot(hcur.astype(cdt), wbr_ref[...], preferred_element_type=jnp.float32)
    y = y + vn[0:1, :]

    lane = lax.broadcasted_iota(jnp.int32, (1, n_pad), 1)
    seg1 = (lane < h).astype(jnp.float32)                              # x1 lanes
    seg2 = jnp.logical_and(lane >= h, lane < h + hl).astype(jnp.float32)  # x2

    # segmented LayerNorm: lanes [0,h) over h features, lanes [h,h+hl) over hl.
    s1 = jnp.sum(y * seg1, axis=-1, keepdims=True)
    q1 = jnp.sum(y * y * seg1, axis=-1, keepdims=True)
    s2 = jnp.sum(y * seg2, axis=-1, keepdims=True)
    q2 = jnp.sum(y * y * seg2, axis=-1, keepdims=True)
    m1 = s1 * (1.0 / h)
    m2 = s2 * (1.0 / hl)
    v1 = jnp.maximum(q1 * (1.0 / h) - m1 * m1, 0.0)
    v2 = jnp.maximum(q2 * (1.0 / hl) - m2 * m2, 0.0)
    inv1 = lax.rsqrt(v1 + _LN_EPS)
    inv2 = lax.rsqrt(v2 + _LN_EPS)
    mean_l = seg1 * m1 + seg2 * m2
    inv_l = seg1 * inv1 + seg2 * inv2
    u = _leaky((y - mean_l) * inv_l * vn[1:2, :] + vn[2:3, :])

    # ---- fused branch stage 2: block-diag(w21, w31) matmul ---------------
    z = jnp.dot(u.astype(cdt), wbd_ref[...], preferred_element_type=jnp.float32)
    z = z + vn[3:4, :]

    # block_2_1 has LayerNorm + LeakyReLU on lanes [0,h); block_3_1 is a plain
    # Linear so lanes [h, h+hl) pass straight through.
    s1 = jnp.sum(z * seg1, axis=-1, keepdims=True)
    q1 = jnp.sum(z * z * seg1, axis=-1, keepdims=True)
    m1 = s1 * (1.0 / h)
    v1 = jnp.maximum(q1 * (1.0 / h) - m1 * m1, 0.0)
    inv1 = lax.rsqrt(v1 + _LN_EPS)
    x1n = _leaky((z - m1) * inv1 * vn[4:5, :] + vn[5:6, :])

    # single lane-dense store, already in [x1 | x2] order (pad lanes -> 0).
    o_ref[...] = (seg1 * x1n + seg2 * z).astype(o_ref.dtype)


def prepare_params(params, use_bf16=True):
    """One-time conversion PyTorch layout -> padded / fused kernel layout."""
    wdt = jnp.bfloat16 if use_bf16 else jnp.float32
    d = params["w0"].shape[0]          # input_dim
    h = params["w2"].shape[0]          # hidden_dim
    hl = params["w3"].shape[0]         # hidden_dim * layers
    dp = _round_up(d, 128)
    n_pad = _round_up(h + hl, 128)

    def pad2(w, rows, cols):
        return jnp.pad(w, ((0, rows - w.shape[0]), (0, cols - w.shape[1])))

    def pad1(v, n):
        return jnp.pad(v, (0, n - v.shape[0]))

    w0 = pad2(params["w0"].T, dp, dp).astype(wdt)
    w1 = pad2(params["w1"].T, dp, dp).astype(wdt)

    # stage-1 branch weight: columns [0,h)=w2^T, [h,h+hl)=w3^T, rest zero.
    wbr = jnp.zeros((dp, n_pad), jnp.float32)
    wbr = wbr.at[:d, :h].set(params["w2"].T)
    wbr = wbr.at[:d, h:h + hl].set(params["w3"].T)
    wbr = wbr.astype(wdt)

    # stage-2 block-diagonal weight: [w21^T, 0; 0, w31^T].
    wbd = jnp.zeros((n_pad, n_pad), jnp.float32)
    wbd = wbd.at[:h, :h].set(params["w21"].T)
    wbd = wbd.at[h:h + hl, h:h + hl].set(params["w31"].T)
    wbd = wbd.astype(wdt)

    zd = jnp.zeros((dp,), jnp.float32)
    zn = jnp.zeros((n_pad,), jnp.float32)
    vec_d = jnp.stack([
        pad1(params["b0"], dp), pad1(params["g0"], dp), pad1(params["t0"], dp),
        pad1(params["b1"], dp), pad1(params["g1"], dp), pad1(params["t1"], dp),
        zd, zd]).astype(jnp.float32)
    vec_n = jnp.stack([
        pad1(jnp.concatenate([params["b2"], params["b3"]]), n_pad),
        pad1(jnp.concatenate([params["g2"], params["g3"]]), n_pad),
        pad1(jnp.concatenate([params["t2"], params["t3"]]), n_pad),
        pad1(jnp.concatenate([params["b21"], params["b31"]]), n_pad),
        pad1(params["g21"], n_pad),
        pad1(params["t21"], n_pad),
        zn, zn]).astype(jnp.float32)

    return dict(w0=w0, w1=w1, wbr=wbr, wbd=wbd, vec_d=vec_d, vec_n=vec_n,
                d=d, h=h, hl=hl, dp=dp, n_pad=n_pad)


def generator_forward(x, prep, *, block_m=2048, out_dtype=jnp.float32):
    """x: (batch, input_dim) f32/bf16.  prep: output of prepare_params()."""
    batch, d = x.shape
    assert d == prep["d"]
    dp, n_pad = prep["dp"], prep["n_pad"]
    h, hl = prep["h"], prep["hl"]
    out_dim = h + hl

    # Match x storage dtype to the weight storage dtype; zero-pad features to
    # a lane-dense 128-multiple (exact: padded lanes stay zero end to end).
    x = x.astype(prep["w0"].dtype)
    if dp != d:
        x = jnp.pad(x, ((0, 0), (0, dp - d)))

    # Batch tile: as large as block_m allows, but capped so the grid has >= 2
    # steps whenever the batch allows it (feeds both v7x TensorCores).
    batch8 = _round_up(batch, 8)
    half = _round_up((batch8 + 1) // 2, 8)
    tm = max(8, min(block_m, half))
    padded = _round_up(batch, tm)
    if padded != batch:
        x = jnp.pad(x, ((0, padded - batch), (0, 0)))
    grid = (padded // tm,)

    kernel = functools.partial(_gen_kernel, d=d, h=h, hl=hl, n_pad=n_pad)

    out = pl.pallas_call(
        kernel,
        out_shape=jax.ShapeDtypeStruct((padded, n_pad), out_dtype),
        grid=grid,
        in_specs=[
            pl.BlockSpec((tm, dp), lambda i: (i, 0)),        # x tile (pipelined)
            # Weights / packed vectors: constant index_map -> resident in VMEM.
            pl.BlockSpec((dp, dp), lambda i: (0, 0)),         # w0
            pl.BlockSpec((dp, dp), lambda i: (0, 0)),         # w1
            pl.BlockSpec((dp, n_pad), lambda i: (0, 0)),      # [w2 | w3]
            pl.BlockSpec((n_pad, n_pad), lambda i: (0, 0)),   # blockdiag(w21,w31)
            pl.BlockSpec((8, dp), lambda i: (0, 0)),          # packed D vectors
            pl.BlockSpec((8, n_pad), lambda i: (0, 0)),       # packed N vectors
        ],
        out_specs=pl.BlockSpec((tm, n_pad), lambda i: (i, 0)),
        compiler_params=pltpu.CompilerParams(
            dimension_semantics=("parallel",)),
    )(x, prep["w0"], prep["w1"], prep["wbr"], prep["wbd"],
      prep["vec_d"], prep["vec_n"])

    return out[:batch, :out_dim]


def init_params(key, input_dim, hidden_dim, layers):
    """PyTorch-layout Generator parameters with deterministic synthetic init."""
    hl = hidden_dim * layers
    dims = {
        "0": (input_dim, input_dim),
        "1": (input_dim, input_dim),
        "2": (hidden_dim, input_dim),
        "21": (hidden_dim, hidden_dim),
        "3": (hl, input_dim),
        "31": (hl, hl),
    }
    params = {}
    keys = jax.random.split(key, 4 * len(dims))
    i = 0
    for name, (fan_out, fan_in) in dims.items():
        bound = 1.0 / jnp.sqrt(jnp.float32(fan_in))
        params[f"w{name}"] = jax.random.uniform(
            keys[i], (fan_out, fan_in), jnp.float32, -bound, bound)
        params[f"b{name}"] = jax.random.uniform(
            keys[i + 1], (fan_out,), jnp.float32, -bound, bound)
        if name != "31":  # block_3_1 is a plain Linear (no LayerNorm)
            params[f"g{name}"] = 1.0 + 0.1 * jax.random.normal(
                keys[i + 2], (fan_out,), jnp.float32)
            params[f"t{name}"] = 0.1 * jax.random.normal(
                keys[i + 3], (fan_out,), jnp.float32)
        i += 4
    return params


def _reference(x, p, mm_dtype=jnp.float32):
    """Pure-JAX reference in the original (unfused, unpadded) layout."""
    def mm(a, w):
        return jnp.dot(a.astype(mm_dtype), w.T.astype(mm_dtype),
                       preferred_element_type=jnp.float32)

    def ln(v, g, b):
        m = jnp.mean(v, -1, keepdims=True)
        var = jnp.mean(jnp.square(v - m), -1, keepdims=True)
        return (v - m) / jnp.sqrt(var + _LN_EPS) * g + b

    def lrelu(v):
        return jnp.where(v > 0, v, _SLOPE * v)

    def block(v, name):
        y = mm(v, p[f"w{name}"]) + p[f"b{name}"]
        return lrelu(ln(y, p[f"g{name}"], p[f"t{name}"]))

    xr = x
    if mm_dtype != jnp.float32:
        xr = x.astype(mm_dtype).astype(jnp.float32)   # mirror bf16 x storage
    h = block(xr, "0") + xr
    h = block(h, "1") + h
    x1 = block(block(h, "2"), "21")
    x2 = mm(block(h, "3"), p["w31"]) + p["b31"]
    return jnp.concatenate([x1, x2], axis=-1)


if __name__ == "__main__":
    key = jax.random.PRNGKey(0)
    k_x, k_p = jax.random.split(key)

    # Small shapes consistent with the module: input_dim=96, hidden_dim=32,
    # layers=3 -> output dim = 32 + 96 = 128 (lane-dense).
    batch, input_dim, hidden_dim, layers = 16, 96, 32, 3
    out_dim = hidden_dim * (layers + 1)

    x = jax.random.normal(k_x, (batch, input_dim), jnp.float32)
    params = init_params(k_p, input_dim, hidden_dim, layers)

    # f32 storage path: correctness check against the pure-JAX reference.
    prep_f32 = prepare_params(params, use_bf16=False)
    out_f32 = jax.block_until_ready(generator_forward(x, prep_f32))
    ref_f32 = _reference(x, params)
    assert out_f32.shape == (batch, out_dim)
    assert jnp.allclose(out_f32, ref_f32, atol=1e-3, rtol=1e-3), (
        float(jnp.max(jnp.abs(out_f32 - ref_f32))))

    # bf16 storage path (default fast path): compare against a bf16-storage
    # reference at a looser tolerance, plus a finiteness check.
    prep_bf16 = prepare_params(params, use_bf16=True)
    out_bf16 = jax.block_until_ready(generator_forward(x, prep_bf16))
    ref_bf16 = _reference(x, params, mm_dtype=jnp.bfloat16)
    assert out_bf16.shape == (batch, out_dim)
    assert bool(jnp.all(jnp.isfinite(out_bf16)))
    assert jnp.allclose(out_bf16, ref_bf16, atol=3e-2, rtol=3e-2), (
        float(jnp.max(jnp.abs(out_bf16 - ref_bf16))))

    print("KERNEL_OK")
</pallas_src>

<mosaic_0001>
module attributes {stable_mosaic.version = 11 : i64} {
  func.func @_gen_kernel(%arg0: i32, %arg1: memref<8x128xf32, #tpu.memory_space<vmem>>, %arg2: memref<128x128xf32, #tpu.memory_space<vmem>>, %arg3: memref<128x128xf32, #tpu.memory_space<vmem>>, %arg4: memref<128x128xf32, #tpu.memory_space<vmem>>, %arg5: memref<128x128xf32, #tpu.memory_space<vmem>>, %arg6: memref<8x128xf32, #tpu.memory_space<vmem>>, %arg7: memref<8x128xf32, #tpu.memory_space<vmem>>, %arg8: memref<8x128xf32, #tpu.memory_space<vmem>>) attributes {dimension_semantics = [#tpu.dimension_semantics<parallel>], iteration_bounds = array<i64: 2>, scalar_prefetch = 0 : i64, scratch_operands = 0 : i64, tpu.core_type = #tpu.core_type<tc>, window_params = [{transform_indices = @transform_0, window_bounds = array<i64: 8, 128>}, {pipeline_mode = #tpu.pipeline_mode<synchronous>, transform_indices = @transform_1, window_bounds = array<i64: 128, 128>}, {pipeline_mode = #tpu.pipeline_mode<synchronous>, transform_indices = @transform_2, window_bounds = array<i64: 128, 128>}, {pipeline_mode = #tpu.pipeline_mode<synchronous>, transform_indices = @transform_3, window_bounds = array<i64: 128, 128>}, {pipeline_mode = #tpu.pipeline_mode<synchronous>, transform_indices = @transform_4, window_bounds = array<i64: 128, 128>}, {pipeline_mode = #tpu.pipeline_mode<synchronous>, transform_indices = @transform_5, window_bounds = array<i64: 8, 128>}, {pipeline_mode = #tpu.pipeline_mode<synchronous>, transform_indices = @transform_6, window_bounds = array<i64: 8, 128>}, {transform_indices = @transform_7, window_bounds = array<i64: 8, 128>}]} {
    %c0 = arith.constant 0 : index
    %c0_0 = arith.constant 0 : index
    %0 = vector.load %arg1[%c0, %c0_0] : memref<8x128xf32, #tpu.memory_space<vmem>>, vector<8x128xf32>
    %c0_1 = arith.constant 0 : index
    %c0_2 = arith.constant 0 : index
    %1 = vector.load %arg6[%c0_1, %c0_2] : memref<8x128xf32, #tpu.memory_space<vmem>>, vector<8x128xf32>
    %c0_3 = arith.constant 0 : index
    %c0_4 = arith.constant 0 : index
    %2 = vector.load %arg7[%c0_3, %c0_4] : memref<8x128xf32, #tpu.memory_space<vmem>>, vector<8x128xf32>
    %c0_5 = arith.constant 0 : index
    %c0_6 = arith.constant 0 : index
    %3 = vector.load %arg2[%c0_5, %c0_6] : memref<128x128xf32, #tpu.memory_space<vmem>>, vector<128x128xf32>
    %cst = arith.constant dense<0.000000e+00> : vector<8x128xf32>
    %4 = tpu.matmul %0, %3, %cst {dimension_numbers = #tpu.dot_dimension_numbers<[1], [0], [0], [1], [0, 0, 1, 1], [], []>} : vector<8x128xf32>, vector<128x128xf32>, vector<8x128xf32> -> vector<8x128xf32>
    %5 = vector.extract_strided_slice %1 {offsets = [0, 0], sizes = [1, 128], strides = [1, 1]} : vector<8x128xf32> to vector<1x128xf32>
    %6 = vector.broadcast %5 : vector<1x128xf32> to vector<8x128xf32>
    %7 = arith.addf %4, %6 : vector<8x128xf32>
    %8 = vector.extract_strided_slice %1 {offsets = [1, 0], sizes = [1, 128], strides = [1, 1]} : vector<8x128xf32> to vector<1x128xf32>
    %9 = vector.extract_strided_slice %1 {offsets = [2, 0], sizes = [1, 128], strides = [1, 1]} : vector<8x128xf32> to vector<1x128xf32>
    %cst_7 = arith.constant dense<0.000000e+00> : vector<8xf32>
    %10 = vector.multi_reduction <add>, %7, %cst_7 [1] : vector<8x128xf32> to vector<8xf32>
    %11 = vector.shape_cast %10 : vector<8xf32> to vector<8x1xf32>
    %cst_8 = arith.constant 0.010416667 : f32
    %12 = vector.broadcast %cst_8 : f32 to vector<8x1xf32>
    %13 = arith.mulf %11, %12 : vector<8x1xf32>
    %14 = arith.mulf %7, %7 : vector<8x128xf32>
    %cst_9 = arith.constant dense<0.000000e+00> : vector<8xf32>
    %15 = vector.multi_reduction <add>, %14, %cst_9 [1] : vector<8x128xf32> to vector<8xf32>
    %16 = vector.shape_cast %15 : vector<8xf32> to vector<8x1xf32>
    %cst_10 = arith.constant 0.010416667 : f32
    %17 = vector.broadcast %cst_10 : f32 to vector<8x1xf32>
    %18 = arith.mulf %16, %17 : vector<8x1xf32>
    %19 = arith.mulf %13, %13 : vector<8x1xf32>
    %20 = arith.subf %18, %19 : vector<8x1xf32>
    %cst_11 = arith.constant 0.000000e+00 : f32
    %21 = vector.broadcast %cst_11 : f32 to vector<8x1xf32>
    %22 = arith.maximumf %20, %21 : vector<8x1xf32>
    %cst_12 = arith.constant 9.99999974E-6 : f32
    %23 = vector.broadcast %cst_12 : f32 to vector<8x1xf32>
    %24 = arith.addf %22, %23 : vector<8x1xf32>
    %25 = math.rsqrt %24 : vector<8x1xf32>
    %26 = vector.broadcast %13 : vector<8x1xf32> to vector<8x128xf32>
    %27 = arith.subf %7, %26 : vector<8x128xf32>
    %28 = vector.broadcast %25 : vector<8x1xf32> to vector<8x128xf32>
    %29 = arith.mulf %27, %28 : vector<8x128xf32>
    %30 = vector.broadcast %8 : vector<1x128xf32> to vector<8x128xf32>
    %31 = arith.mulf %29, %30 : vector<8x128xf32>
    %32 = vector.broadcast %9 : vector<1x128xf32> to vector<8x128xf32>
    %33 = arith.addf %31, %32 : vector<8x128xf32>
    %cst_13 = arith.constant 2.000000e-01 : f32
    %34 = vector.broadcast %cst_13 : f32 to vector<8x128xf32>
    %35 = arith.mulf %34, %33 : vector<8x128xf32>
    %36 = arith.maximumf %33, %35 : vector<8x128xf32>
    %37 = arith.addf %36, %0 : vector<8x128xf32>
    %c0_14 = arith.constant 0 : index
    %c0_15 = arith.constant 0 : index
    %38 = vector.load %arg3[%c0_14, %c0_15] : memref<128x128xf32, #tpu.memory_space<vmem>>, vector<128x128xf32>
    %cst_16 = arith.constant dense<0.000000e+00> : vector<8x128xf32>
    %39 = tpu.matmul %37, %38, %cst_16 {dimension_numbers = #tpu.dot_dimension_numbers<[1], [0], [0], [1], [0, 0, 1, 1], [], []>} : vector<8x128xf32>, vector<128x128xf32>, vector<8x128xf32> -> vector<8x128xf32>
    %40 = vector.extract_strided_slice %1 {offsets = [3, 0], sizes = [1, 128], strides = [1, 1]} : vector<8x128xf32> to vector<1x128xf32>
    %41 = vector.broadcast %40 : vector<1x128xf32> to vector<8x128xf32>
    %42 = arith.addf %39, %41 : vector<8x128xf32>
    %43 = vector.extract_strided_slice %1 {offsets = [4, 0], sizes = [1, 128], strides = [1, 1]} : vector<8x128xf32> to vector<1x128xf32>
    %44 = vector.extract_strided_slice %1 {offsets = [5, 0], sizes = [1, 128], strides = [1, 1]} : vector<8x128xf32> to vector<1x128xf32>
    %cst_17 = arith.constant dense<0.000000e+00> : vector<8xf32>
    %45 = vector.multi_reduction <add>, %42, %cst_17 [1] : vector<8x128xf32> to vector<8xf32>
    %46 = vector.shape_cast %45 : vector<8xf32> to vector<8x1xf32>
    %cst_18 = arith.constant 0.010416667 : f32
    %47 = vector.broadcast %cst_18 : f32 to vector<8x1xf32>
    %48 = arith.mulf %46, %47 : vector<8x1xf32>
    %49 = arith.mulf %42, %42 : vector<8x128xf32>
    %cst_19 = arith.constant dense<0.000000e+00> : vector<8xf32>
    %50 = vector.multi_reduction <add>, %49, %cst_19 [1] : vector<8x128xf32> to vector<8xf32>
    %51 = vector.shape_cast %50 : vector<8xf32> to vector<8x1xf32>
    %cst_20 = arith.constant 0.010416667 : f32
    %52 = vector.broadcast %cst_20 : f32 to vector<8x1xf32>
    %53 = arith.mulf %51, %52 : vector<8x1xf32>
    %54 = arith.mulf %48, %48 : vector<8x1xf32>
    %55 = arith.subf %53, %54 : vector<8x1xf32>
    %cst_21 = arith.constant 0.000000e+00 : f32
    %56 = vector.broadcast %cst_21 : f32 to vector<8x1xf32>
    %57 = arith.maximumf %55, %56 : vector<8x1xf32>
    %cst_22 = arith.constant 9.99999974E-6 : f32
    %58 = vector.broadcast %cst_22 : f32 to vector<8x1xf32>
    %59 = arith.addf %57, %58 : vector<8x1xf32>
    %60 = math.rsqrt %59 : vector<8x1xf32>
    %61 = vector.broadcast %48 : vector<8x1xf32> to vector<8x128xf32>
    %62 = arith.subf %42, %61 : vector<8x128xf32>
    %63 = vector.broadcast %60 : vector<8x1xf32> to vector<8x128xf32>
    %64 = arith.mulf %62, %63 : vector<8x128xf32>
    %65 = vector.broadcast %43 : vector<1x128xf32> to vector<8x128xf32>
    %66 = arith.mulf %64, %65 : vector<8x128xf32>
    %67 = vector.broadcast %44 : vector<1x128xf32> to vector<8x128xf32>
    %68 = arith.addf %66, %67 : vector<8x128xf32>
    %cst_23 = arith.constant 2.000000e-01 : f32
    %69 = vector.broadcast %cst_23 : f32 to vector<8x128xf32>
    %70 = arith.mulf %69, %68 : vector<8x128xf32>
    %71 = arith.maximumf %68, %70 : vector<8x128xf32>
    %72 = arith.addf %71, %37 : vector<8x128xf32>
    %c0_24 = arith.constant 0 : index
    %c0_25 = arith.constant 0 : index
    %73 = vector.load %arg4[%c0_24, %c0_25] : memref<128x128xf32, #tpu.memory_space<vmem>>, vector<128x128xf32>
    %cst_26 = arith.constant dense<0.000000e+00> : vector<8x128xf32>
    %74 = tpu.matmul %72, %73, %cst_26 {dimension_numbers = #tpu.dot_dimension_numbers<[1], [0], [0], [1], [0, 0, 1, 1], [], []>} : vector<8x128xf32>, vector<128x128xf32>, vector<8x128xf32> -> vector<8x128xf32>
    %75 = vector.extract_strided_slice %2 {offsets = [0, 0], sizes = [1, 128], strides = [1, 1]} : vector<8x128xf32> to vector<1x128xf32>
    %76 = vector.broadcast %75 : vector<1x128xf32> to vector<8x128xf32>
    %77 = arith.addf %74, %76 : vector<8x128xf32>
    %78 = tpu.iota {dimensions = array<i32: 1>} : vector<1x128xi32>
    %c32_i32 = arith.constant 32 : i32
    %79 = vector.broadcast %c32_i32 : i32 to vector<1x128xi32>
    %80 = arith.cmpi slt, %78, %79 : vector<1x128xi32>
    %81 = arith.extui %80 : vector<1x128xi1> to vector<1x128xi32>
    %82 = arith.sitofp %81 : vector<1x128xi32> to vector<1x128xf32>
    %c32_i32_27 = arith.constant 32 : i32
    %83 = vector.broadcast %c32_i32_27 : i32 to vector<1x128xi32>
    %84 = arith.cmpi sge, %78, %83 : vector<1x128xi32>
    %c128_i32 = arith.constant 128 : i32
    %85 = vector.broadcast %c128_i32 : i32 to vector<1x128xi32>
    %86 = arith.cmpi slt, %78, %85 : vector<1x128xi32>
    %87 = arith.andi %84, %86 : vector<1x128xi1>
    %88 = arith.extui %87 : vector<1x128xi1> to vector<1x128xi32>
    %89 = arith.sitofp %88 : vector<1x128xi32> to vector<1x128xf32>
    %90 = vector.broadcast %82 : vector<1x128xf32> to vector<8x128xf32>
    %91 = arith.mulf %77, %90 : vector<8x128xf32>
    %cst_28 = arith.constant dense<0.000000e+00> : vector<8xf32>
    %92 = vector.multi_reduction <add>, %91, %cst_28 [1] : vector<8x128xf32> to vector<8xf32>
    %93 = vector.shape_cast %92 : vector<8xf32> to vector<8x1xf32>
    %94 = arith.mulf %77, %77 : vector<8x128xf32>
    %95 = vector.broadcast %82 : vector<1x128xf32> to vector<8x128xf32>
    %96 = arith.mulf %94, %95 : vector<8x128xf32>
    %cst_29 = arith.constant dense<0.000000e+00> : vector<8xf32>
    %97 = vector.multi_reduction <add>, %96, %cst_29 [1] : vector<8x128xf32> to vector<8xf32>
    %98 = vector.shape_cast %97 : vector<8xf32> to vector<8x1xf32>
    %99 = vector.broadcast %89 : vector<1x128xf32> to vector<8x128xf32>
    %100 = arith.mulf %77, %99 : vector<8x128xf32>
    %cst_30 = arith.constant dense<0.000000e+00> : vector<8xf32>
    %101 = vector.multi_reduction <add>, %100, %cst_30 [1] : vector<8x128xf32> to vector<8xf32>
    %102 = vector.shape_cast %101 : vector<8xf32> to vector<8x1xf32>
    %103 = arith.mulf %77, %77 : vector<8x128xf32>
    %104 = vector.broadcast %89 : vector<1x128xf32> to vector<8x128xf32>
    %105 = arith.mulf %103, %104 : vector<8x128xf32>
    %cst_31 = arith.constant dense<0.000000e+00> : vector<8xf32>
    %106 = vector.multi_reduction <add>, %105, %cst_31 [1] : vector<8x128xf32> to vector<8xf32>
    %107 = vector.shape_cast %106 : vector<8xf32> to vector<8x1xf32>
    %cst_32 = arith.constant 3.125000e-02 : f32
    %108 = vector.broadcast %cst_32 : f32 to vector<8x1xf32>
    %109 = arith.mulf %93, %108 : vector<8x1xf32>
    %cst_33 = arith.constant 0.010416667 : f32
    %110 = vector.broadcast %cst_33 : f32 to vector<8x1xf32>
    %111 = arith.mulf %102, %110 : vector<8x1xf32>
    %cst_34 = arith.constant 3.125000e-02 : f32
    %112 = vector.broadcast %cst_34 : f32 to vector<8x1xf32>
    %113 = arith.mulf %98, %112 : vector<8x1xf32>
    %114 = arith.mulf %109, %109 : vector<8x1xf32>
    %115 = arith.subf %113, %114 : vector<8x1xf32>
    %cst_35 = arith.constant 0.000000e+00 : f32
    %116 = vector.broadcast %cst_35 : f32 to vector<8x1xf32>
    %117 = arith.maximumf %115, %116 : vector<8x1xf32>
    %cst_36 = arith.constant 0.010416667 : f32
    %118 = vector.broadcast %cst_36 : f32 to vector<8x1xf32>
    %119 = arith.mulf %107, %118 : vector<8x1xf32>
    %120 = arith.mulf %111, %111 : vector<8x1xf32>
    %121 = arith.subf %119, %120 : vector<8x1xf32>
    %cst_37 = arith.constant 0.000000e+00 : f32
    %122 = vector.broadcast %cst_37 : f32 to vector<8x1xf32>
    %123 = arith.maximumf %121, %122 : vector<8x1xf32>
    %cst_38 = arith.constant 9.99999974E-6 : f32
    %124 = vector.broadcast %cst_38 : f32 to vector<8x1xf32>
    %125 = arith.addf %117, %124 : vector<8x1xf32>
    %126 = math.rsqrt %125 : vector<8x1xf32>
    %cst_39 = arith.constant 9.99999974E-6 : f32
    %127 = vector.broadcast %cst_39 : f32 to vector<8x1xf32>
    %128 = arith.addf %123, %127 : vector<8x1xf32>
    %129 = math.rsqrt %128 : vector<8x1xf32>
    %130 = vector.broadcast %82 : vector<1x128xf32> to vector<8x128xf32>
    %131 = vector.broadcast %109 : vector<8x1xf32> to vector<8x128xf32>
    %132 = arith.mulf %130, %131 : vector<8x128xf32>
    %133 = vector.broadcast %89 : vector<1x128xf32> to vector<8x128xf32>
    %134 = vector.broadcast %111 : vector<8x1xf32> to vector<8x128xf32>
    %135 = arith.mulf %133, %134 : vector<8x128xf32>
    %136 = arith.addf %132, %135 : vector<8x128xf32>
    %137 = vector.broadcast %82 : vector<1x128xf32> to vector<8x128xf32>
    %138 = vector.broadcast %126 : vector<8x1xf32> to vector<8x128xf32>
    %139 = arith.mulf %137, %138 : vector<8x128xf32>
    %140 = vector.broadcast %89 : vector<1x128xf32> to vector<8x128xf32>
    %141 = vector.broadcast %129 : vector<8x1xf32> to vector<8x128xf32>
    %142 = arith.mulf %140, %141 : vector<8x128xf32>
    %143 = arith.addf %139, %142 : vector<8x128xf32>
    %144 = arith.subf %77, %136 : vector<8x128xf32>
    %145 = arith.mulf %144, %143 : vector<8x128xf32>
    %146 = vector.extract_strided_slice %2 {offsets = [1, 0], sizes = [1, 128], strides = [1, 1]} : vector<8x128xf32> to vector<1x128xf32>
    %147 = vector.broadcast %146 : vector<1x128xf32> to vector<8x128xf32>
    %148 = arith.mulf %145, %147 : vector<8x128xf32>
    %149 = vector.extract_strided_slice %2 {offsets = [2, 0], sizes = [1, 128], strides = [1, 1]} : vector<8x128xf32> to vector<1x128xf32>
    %150 = vector.broadcast %149 : vector<1x128xf32> to vector<8x128xf32>
    %151 = arith.addf %148, %150 : vector<8x128xf32>
    %cst_40 = arith.constant 2.000000e-01 : f32
    %152 = vector.broadcast %cst_40 : f32 to vector<8x128xf32>
    %153 = arith.mulf %152, %151 : vector<8x128xf32>
    %154 = arith.maximumf %151, %153 : vector<8x128xf32>
    %c0_41 = arith.constant 0 : index
    %c0_42 = arith.constant 0 : index
    %155 = vector.load %arg5[%c0_41, %c0_42] : memref<128x128xf32, #tpu.memory_space<vmem>>, vector<128x128xf32>
    %cst_43 = arith.constant dense<0.000000e+00> : vector<8x128xf32>
    %156 = tpu.matmul %154, %155, %cst_43 {dimension_numbers = #tpu.dot_dimension_numbers<[1], [0], [0], [1], [0, 0, 1, 1], [], []>} : vector<8x128xf32>, vector<128x128xf32>, vector<8x128xf32> -> vector<8x128xf32>
    %157 = vector.extract_strided_slice %2 {offsets = [3, 0], sizes = [1, 128], strides = [1, 1]} : vector<8x128xf32> to vector<1x128xf32>
    %158 = vector.broadcast %157 : vector<1x128xf32> to vector<8x128xf32>
    %159 = arith.addf %156, %158 : vector<8x128xf32>
    %160 = vector.broadcast %82 : vector<1x128xf32> to vector<8x128xf32>
    %161 = arith.mulf %159, %160 : vector<8x128xf32>
    %cst_44 = arith.constant dense<0.000000e+00> : vector<8xf32>
    %162 = vector.multi_reduction <add>, %161, %cst_44 [1] : vector<8x128xf32> to vector<8xf32>
    %163 = vector.shape_cast %162 : vector<8xf32> to vector<8x1xf32>
    %164 = arith.mulf %159, %159 : vector<8x128xf32>
    %165 = vector.broadcast %82 : vector<1x128xf32> to vector<8x128xf32>
    %166 = arith.mulf %164, %165 : vector<8x128xf32>
    %cst_45 = arith.constant dense<0.000000e+00> : vector<8xf32>
    %167 = vector.multi_reduction <add>, %166, %cst_45 [1] : vector<8x128xf32> to vector<8xf32>
    %168 = vector.shape_cast %167 : vector<8xf32> to vector<8x1xf32>
    %cst_46 = arith.constant 3.125000e-02 : f32
    %169 = vector.broadcast %cst_46 : f32 to vector<8x1xf32>
    %170 = arith.mulf %163, %169 : vector<8x1xf32>
    %cst_47 = arith.constant 3.125000e-02 : f32
    %171 = vector.broadcast %cst_47 : f32 to vector<8x1xf32>
    %172 = arith.mulf %168, %171 : vector<8x1xf32>
    %173 = arith.mulf %170, %170 : vector<8x1xf32>
    %174 = arith.subf %172, %173 : vector<8x1xf32>
    %cst_48 = arith.constant 0.000000e+00 : f32
    %175 = vector.broadcast %cst_48 : f32 to vector<8x1xf32>
    %176 = arith.maximumf %174, %175 : vector<8x1xf32>
    %cst_49 = arith.constant 9.99999974E-6 : f32
    %177 = vector.broadcast %cst_49 : f32 to vector<8x1xf32>
    %178 = arith.addf %176, %177 : vector<8x1xf32>
    %179 = math.rsqrt %178 : vector<8x1xf32>
    %180 = vector.broadcast %170 : vector<8x1xf32> to vector<8x128xf32>
    %181 = arith.subf %159, %180 : vector<8x128xf32>
    %182 = vector.broadcast %179 : vector<8x1xf32> to vector<8x128xf32>
    %183 = arith.mulf %181, %182 : vector<8x128xf32>
    %184 = vector.extract_strided_slice %2 {offsets = [4, 0], sizes = [1, 128], strides = [1, 1]} : vector<8x128xf32> to vector<1x128xf32>
    %185 = vector.broadcast %184 : vector<1x128xf32> to vector<8x128xf32>
    %186 = arith.mulf %183, %185 : vector<8x128xf32>
    %187 = vector.extract_strided_slice %2 {offsets = [5, 0], sizes = [1, 128], strides = [1, 1]} : vector<8x128xf32> to vector<1x128xf32>
    %188 = vector.broadcast %187 : vector<1x128xf32> to vector<8x128xf32>
    %189 = arith.addf %186, %188 : vector<8x128xf32>
    %cst_50 = arith.constant 2.000000e-01 : f32
    %190 = vector.broadcast %cst_50 : f32 to vector<8x128xf32>
    %191 = arith.mulf %190, %189 : vector<8x128xf32>
    %192 = arith.maximumf %189, %191 : vector<8x128xf32>
    %193 = vector.broadcast %82 : vector<1x128xf32> to vector<8x128xf32>
    %194 = arith.mulf %193, %192 : vector<8x128xf32>
    %195 = vector.broadcast %89 : vector<1x128xf32> to vector<8x128xf32>
    %196 = arith.mulf %195, %159 : vector<8x128xf32>
    %197 = arith.addf %194, %196 : vector<8x128xf32>
    %c0_51 = arith.constant 0 : index
    %c0_52 = arith.constant 0 : index
    %198 = vector.load %arg8[%c0_51, %c0_52] : memref<8x128xf32, #tpu.memory_space<vmem>>, vector<8x128xf32>
    tpu.vector_store %arg8[%c0_51, %c0_52], %197 {strides = array<i32>} : memref<8x128xf32, #tpu.memory_space<vmem>>, vector<8x128xf32>,
    return
  }
  func.func @transform_0(%arg0: i32) -> (i32, i32) {
    %c0_i32 = arith.constant 0 : i32
    %c0_i32_0 = arith.constant 0 : i32
    return %arg0, %c0_i32 : i32, i32
  }
  func.func @transform_1(%arg0: i32) -> (i32, i32) {
    %c0_i32 = arith.constant 0 : i32
    %c0_i32_0 = arith.constant 0 : i32
    %c0_i32_1 = arith.constant 0 : i32
    return %c0_i32, %c0_i32_0 : i32, i32
  }
  func.func @transform_2(%arg0: i32) -> (i32, i32) {
    %c0_i32 = arith.constant 0 : i32
    %c0_i32_0 = arith.constant 0 : i32
    %c0_i32_1 = arith.constant 0 : i32
    return %c0_i32, %c0_i32_0 : i32, i32
  }
  func.func @transform_3(%arg0: i32) -> (i32, i32) {
    %c0_i32 = arith.constant 0 : i32
    %c0_i32_0 = arith.constant 0 : i32
    %c0_i32_1 = arith.constant 0 : i32
    return %c0_i32, %c0_i32_0 : i32, i32
  }
  func.func @transform_4(%arg0: i32) -> (i32, i32) {
    %c0_i32 = arith.constant 0 : i32
    %c0_i32_0 = arith.constant 0 : i32
    %c0_i32_1 = arith.constant 0 : i32
    return %c0_i32, %c0_i32_0 : i32, i32
  }
  func.func @transform_5(%arg0: i32) -> (i32, i32) {
    %c0_i32 = arith.constant 0 : i32
    %c0_i32_0 = arith.constant 0 : i32
    %c0_i32_1 = arith.constant 0 : i32
    return %c0_i32, %c0_i32_0 : i32, i32
  }
  func.func @transform_6(%arg0: i32) -> (i32, i32) {
    %c0_i32 = arith.constant 0 : i32
    %c0_i32_0 = arith.constant 0 : i32
    %c0_i32_1 = arith.constant 0 : i32
    return %c0_i32, %c0_i32_0 : i32, i32
  }
  func.func @transform_7(%arg0: i32) -> (i32, i32) {
    %c0_i32 = arith.constant 0 : i32
    %c0_i32_0 = arith.constant 0 : i32
    return %arg0, %c0_i32 : i32, i32
  }
}

</mosaic_0001>

<bundles_post_ra>
// kernel: tpu_custom_call.1
= control target key start
LH: loop header
LB: loop body
LE: loop exit
PB: predicated region body
PF: predicated region fallthrough
CT: control target
= control target key end

     0   :  { %12 = vsyncpa [#allocation3], 0  ;;  %s2105_s0 = inlined_call_operand.hbm [shape: f32[16,128], index: 0, kind: input, shape index: {}]   ;;  %s2106_s1 = inlined_call_operand.hbm [shape: f32[128,128], index: 1, kind: input, shape index: {}]   ;;  %s2107_s2 = inlined_call_operand.hbm [shape: f32[128,128], index: 2, kind: input, shape index: {}]   ;;  %s2108_s3 = inlined_call_operand.hbm [shape: f32[128,128], index: 3, kind: input, shape index: {}]   ;;  %s2109_s4 = inlined_call_operand.hbm [shape: f32[128,128], index: 4, kind: input, shape index: {}]   ;;  %s2110_s5 = inlined_call_operand.vmem [shape: f32[8,128], index: 5, kind: input, shape index: {}]   ;;  %s2111_s6 = inlined_call_operand.vmem [shape: f32[8,128], index: 6, kind: input, shape index: {}]   ;;  %s2112_s7 = inlined_call_operand.hbm [shape: f32[16,128], index: 7, kind: output, shape index: {}]  }
   0x1   :  { %14 = vsyncpa [#allocation3 + $0x1], 0 }
   0x2   :  { %15 = vsyncpa [#allocation6], 0 }
   0x3   :  { %16 = vsyncpa [#allocation9], 0 }
   0x4   :  { %17 = vsyncpa [#allocation4], 0 }
   0x5   :  { %19 = vsyncpa [#allocation4 + $0x1], 0  ;;  %s1677_s24 = smov 0   ;;  %s1679_s25 = smov 0  }
   0x6   :  { %s1681_s26 = smov 0   ;;  %s1683_s27 = smov 0  }
   0x7 LB: > { %s1626_s28 = smov [#allocation5]   ;;  %s1698_s30 = sadd.s32 4294967295, %s1624_s27   ;;  %s1624_s27 = sphi %s1683_s27, %s2136_s27   ;;  %s1620_s26 = sphi %s1681_s26, %s2135_s26   ;;  %s1616_s25 = sphi %s1679_s25, %s2134_s25   ;;  %s1612_s24 = sphi %s1677_s24, %s2133_s24  }
   0x8   : > { %s220_s29 = sshll.u32 %s1626_s28, 4  ;;  %p981_p0 = scmp.ge.s32.totalorder %s1624_s27, 1  ;;  %s1703_s29 = int_to_ptr.vmem [resolvable:$true] %s220_s29 }
   0x9   : > { %p2113_p1 = scmp.eq.s32.totalorder %s1698_s30, 0  ;;  %p208_p2 = scmp.lt.s32.totalorder %s1624_s27, 3 }
   0xa   : > { %s1627_s9 = smov [#allocation8]   ;;  %s1628_s12 = smov [#allocation7]  }
   0xb   : > { %p1705_p3 = pnand %p981_p0, %p208_p2  ;;  %s246_s10 = sshll.u32 %s1627_s9, 4  ;;  %s1718_s10 = int_to_ptr.vmem [resolvable:$true] %s246_s10 }
   0xc   : > { %s233_s13 = sshll.u32 %s1628_s12, 4  ;;  %s1408_s16 = scalar_lea.hbm %s2106_s1, 2048  ;;  %s1720_s13 = int_to_ptr.vmem [resolvable:$true] %s233_s13 }
   0xd   : > { %s2116_s8 = scalar_select %p1705_p3, 1, 0 }
   0xe   : > { %p1326_p5 = pneg %p1705_p3  ;;  %p1409_p7 = scmp.ne.s32.totalorder %s2106_s1, %s1408_s16 }
   0xf   : > { %p1415_p11 = scmp.lt.u32.totalorder %s1408_s16, %s2106_s1 }
  0x10   : > { %p1714_p6 = pnand %p1326_p5, %p2113_p1 }
  0x12   : > { %p1730_p8 = pneg %p1714_p6 }
  0x14   : > { %p1411_p9 = pnand %p1730_p8, %p1409_p7 }
  0x16   : > { %p1412_p10 = pneg %p1411_p9 }
  0x18   : > { %p1417_p12 = pnand %p1415_p11, %p1412_p10 }
  0x1a   : > { %1420 = shalt.err (!%p1417_p12)
}
  0x1b   : > { %s1421_s22 = scalar_lea.vmem %s1703_s29, 2048  ;;  %p1429_p5 = scmp.lt.s32.totalorder %s1703_s29, %s1703_s29 }
  0x1c   : > { %p1422_p13 = scmp.ne.s32.totalorder %s1703_s29, %s1421_s22  ;;  %p1430_p4 = scmp.lt.s32.totalorder %s1421_s22, %s1421_s22 }
  0x1e   : > { %p1424_p0 = pnand %p1422_p13, %p1730_p8  ;;  %p1431_p7 = por %p1430_p4, %p1429_p5 }
  0x20   : > { %p1425_p2 = pneg %p1424_p0 }
  0x22   : > { %p1432_p9 = pnand %p1431_p7, %p1425_p2 }
  0x24   : > { %1435 = shalt.err (!%p1432_p9)
}
  0x25   : > { %s1629_s23 = smov 128   ;;  %s1630_s28 = smov 8  }
  0x26   : > { %1329 = dma.hbm_to_vmem [thread:$0]  (!%p1714_p6), %s2106_s1, 2048, %s1703_s29, [#allocation6], %s1629_s23, %s1629_s23, %s1630_s28  }
  0x27   : > { %s1436_s16 = scalar_lea.hbm %s2108_s3, 2048 }
  0x28   : > { %p1437_p4 = scmp.ne.s32.totalorder %s2108_s3, %s1436_s16  ;;  %p1443_p12 = scmp.lt.u32.totalorder %s1436_s16, %s2108_s3 }
  0x2a   : > { %p1439_p10 = pnand %p1437_p4, %p1730_p8 }
  0x2c   : > { %p1440_p11 = pneg %p1439_p10 }
  0x2e   : > { %p1445_p13 = pnand %p1443_p12, %p1440_p11 }
  0x30   : > { %1448 = shalt.err (!%p1445_p13)
}
  0x31   : > { %s1449_s29 = scalar_lea.vmem %s1718_s10, 2048  ;;  %p1457_p7 = scmp.lt.s32.totalorder %s1718_s10, %s1718_s10 }
  0x32   : > { %p1450_p0 = scmp.ne.s32.totalorder %s1718_s10, %s1449_s29  ;;  %p1458_p9 = scmp.lt.s32.totalorder %s1449_s29, %s1449_s29 }
  0x34   : > { %p1452_p2 = pnand %p1450_p0, %p1730_p8  ;;  %p1459_p4 = por %p1458_p9, %p1457_p7 }
  0x36   : > { %p1453_p5 = pneg %p1452_p2 }
  0x38   : > { %p1460_p10 = pnand %p1459_p4, %p1453_p5 }
  0x3a   : > { %1463 = shalt.err (!%p1460_p10)
}
  0x3b   : > { %1335 = dma.hbm_to_vmem [thread:$0]  (!%p1714_p6), %s2108_s3, 2048, %s1718_s10, [#allocation9], %s1629_s23, %s1629_s23, %s1630_s28  }
  0x3c   : > { %s1464_s15 = scalar_lea.hbm %s2107_s2, 2048 }
  0x3d   : > { %p1465_p11 = scmp.ne.s32.totalorder %s2107_s2, %s1464_s15  ;;  %p1471_p0 = scmp.lt.u32.totalorder %s1464_s15, %s2107_s2 }
  0x3f   : > { %p1467_p12 = pnand %p1465_p11, %p1730_p8 }
  0x41   : > { %p1468_p13 = pneg %p1467_p12 }
  0x43   : > { %p1473_p2 = pnand %p1471_p0, %p1468_p13 }
  0x45   : > { %1476 = shalt.err (!%p1473_p2)
}
  0x46   : > { %s1477_s10 = scalar_lea.vmem %s1720_s13, 2048  ;;  %p1485_p4 = scmp.lt.s32.totalorder %s1720_s13, %s1720_s13 }
  0x47   : > { %p1478_p5 = scmp.ne.s32.totalorder %s1720_s13, %s1477_s10  ;;  %p1486_p10 = scmp.lt.s32.totalorder %s1477_s10, %s1477_s10 }
  0x49   : > { %p1480_p7 = pnand %p1478_p5, %p1730_p8  ;;  %p1487_p11 = por %p1486_p10, %p1485_p4 }
  0x4b   : > { %p1481_p9 = pneg %p1480_p7 }
  0x4d   : > { %p1488_p12 = pnand %p1487_p11, %p1481_p9 }
  0x4f   : > { %1491 = shalt.err (!%p1488_p12)
}
  0x50   : > { %1332 = dma.hbm_to_vmem [thread:$0]  (!%p1714_p6), %s2107_s2, 2048, %s1720_s13, [#allocation6], %s1629_s23, %s1629_s23, %s1630_s28  }
  0x51   : > { %s1631_s22 = smov [#allocation10]   ;;  %s1492_s15 = scalar_lea.hbm %s2109_s4, 2048 }
  0x52   : > { %s259_s9 = sshll.u32 %s1631_s22, 4  ;;  %p1493_p13 = scmp.ne.s32.totalorder %s2109_s4, %s1492_s15  ;;  %s260_s9 = int_to_ptr.vmem [resolvable:$true] %s259_s9 }
  0x53   : > { %p1499_p5 = scmp.lt.u32.totalorder %s1492_s15, %s2109_s4 }
  0x54   : > { %p1495_p0 = pnand %p1493_p13, %p1730_p8 }
  0x56   : > { %p1496_p2 = pneg %p1495_p0 }
  0x58   : > { %p1501_p7 = pnand %p1499_p5, %p1496_p2 }
  0x5a   : > { %1504 = shalt.err (!%p1501_p7)
}
  0x5b   : > { %s1505_s13 = scalar_lea.vmem %s260_s9, 2048  ;;  %p1513_p11 = scmp.lt.s32.totalorder %s260_s9, %s260_s9 }
  0x5c   : > { %p1506_p9 = scmp.ne.s32.totalorder %s260_s9, %s1505_s13  ;;  %p1514_p12 = scmp.lt.s32.totalorder %s1505_s13, %s1505_s13 }
  0x5e   : > { %p1508_p4 = pnand %p1506_p9, %p1730_p8  ;;  %p1515_p1 = por %p1514_p12, %p1513_p11 }
  0x60   : > { %p1509_p10 = pneg %p1508_p4 }
  0x62   : > { %p1516_p3 = pnand %p1515_p1, %p1509_p10 }
  0x64   : > { %1519 = shalt.err (!%p1516_p3)
}
  0x65   : > { %1338 = dma.hbm_to_vmem [thread:$0]  (!%p1714_p6), %s2109_s4, 2048, %s260_s9, [#allocation9], %s1629_s23, %s1629_s23, %s1630_s28  }
  0x66   : > { %s980_s11 = sadd.s32 4294967294, %s1624_s27   ;;  %s1829_s19 = sadd.s32 1, %s1624_s27  }
  0x67   : > { %s29_s29 = ssub.s32 %s1624_s27, %s1829_s19  ;;  %s32_s22 = sadd.s32 1, %s1620_s26 }
  0x68   : > { %p30_p1 = scmp.eq.s32.totalorder %s29_s29, 0  ;;  %p39_p3 = scmp.ne.s32.totalorder %s1620_s26, %s1616_s25 }
  0x69   : > { %p40_p8 = scmp.eq.s32.totalorder %s1624_s27, 0  ;;  %p45_p13 = scmp.ne.s32.totalorder %s1616_s25, %s1612_s24 }
  0x6a   : > { %s1840_s12 = scalar_select %p30_p1, %s1620_s26, %s32_s22  }
  0x6b   : > { %p1842_p0 = por %p40_p8, %p39_p3  ;;  %p2120_p2 = scmp.eq.s32.totalorder %s1698_s30, 0 }
  0x6c   : > { %p195_p5 = scmp.eq.s32.totalorder %s1698_s30, 1  ;;  %p201_p7 = scmp.eq.s32.totalorder %s980_s11, 1 }
  0x6d   : > { %p1848_p6 = por %p2120_p2, %p45_p13  ;;  %p1351_p9 = scmp.lt.s32.totalorder %s1624_s27, 2 }
  0x6e   : > { %s279_s28 = sand.u32 1, %s1620_s26   ;;  %p1855_p4 = por %p195_p5, %p39_p3 }
  0x6f   : > { %p1859_p10 = por %p201_p7, %p45_p13  ;;  %s987_s16 = sshll.u32 %s279_s28, 3 }
  0x70   : > { %s2122_s9 = scalar_select %p1855_p4, 1, 0 }
  0x71   : > { %s2123_s15 = scalar_select %p1859_p10, 1, 0 }
  0x72   : > { %s988_s17 = sshll.u32 %s1624_s27, 7  ;;  %s283_s10 = scalar_lea.vmem [#allocation2], %s987_s16 }
  0x73   : > { %s1867_s13 = scalar_lea.hbm %s2105_s0, %s988_s17  ;;  %s290_s21 = sshll.u32 %s283_s10, 4  ;;  %s1869_s21 = int_to_ptr.vmem [resolvable:$true] %s290_s21 }
  0x74   : > { %p1873_p11 = pnand %p1351_p9, %p1842_p0  ;;  %s280_s29 = scalar_lea.sflag [#allocation3], %s279_s28 }
  0x75   : > { %s1520_s22 = scalar_lea.hbm %s1867_s13, 128  ;;  %s1525_s18 = scalar_lea.hbm %s2105_s0, 256 }
  0x76   : > { %p1521_p12 = scmp.ne.s32.totalorder %s1867_s13, %s1520_s22  ;;  %p1522_p1 = pneg %p1873_p11 }
  0x77   : > { %p1526_p13 = scmp.lt.u32.totalorder %s1867_s13, %s2105_s0  ;;  %p1527_p0 = scmp.lt.u32.totalorder %s1525_s18, %s1520_s22 }
  0x78   : > { %p1523_p3 = pnand %p1522_p1, %p1521_p12  ;;  %p1529_p5 = scmp.lt.u32.totalorder %s1520_s22, %s1867_s13 }
  0x79   : > { %p1528_p2 = por %p1527_p0, %p1526_p13 }
  0x7a   : > { %p1524_p8 = pneg %p1523_p3 }
  0x7b   : > { %p1530_p7 = por %p1529_p5, %p1528_p2 }
  0x7d   : > { %p1531_p9 = pnand %p1530_p7, %p1524_p8 }
  0x7f   : > { %1534 = shalt.err (!%p1531_p9)
}
  0x80   : > { %s1535_s28 = scalar_lea.vmem %s1869_s21, 128  ;;  %s1632_s10 = smov [#allocation2]  }
  0x81   : > { %p1536_p12 = scmp.ne.s32.totalorder %s1869_s21, %s1535_s28  ;;  %s1540_s16 = sshll.u32 %s1632_s10, 4  ;;  %s1541_s16 = int_to_ptr.vmem [resolvable:$false] %s1540_s16 }
  0x82   : > { %s1542_s17 = scalar_lea.vmem %s1541_s16, 256  ;;  %p1543_p4 = scmp.lt.s32.totalorder %s1869_s21, %s1541_s16 }
  0x83   : > { %p1538_p3 = pnand %p1536_p12, %p1522_p1  ;;  %p1544_p13 = scmp.lt.s32.totalorder %s1542_s17, %s1535_s28 }
  0x85   : > { %p1539_p10 = pneg %p1538_p3  ;;  %p1545_p0 = por %p1544_p13, %p1543_p4 }
  0x87   : > { %p1546_p2 = pnand %p1545_p0, %p1539_p10 }
  0x89   : > { %1549 = shalt.err (!%p1546_p2)
}
  0x8a   : > { %1342 = dma.hbm_to_vmem [thread:$0]  (!%p1873_p11), %s1867_s13, 128, %s1869_s21, %s280_s29  }
  0x8b   : > { %p2125_p8 = scmp.ne.s32.totalorder %s2116_s8, 0 }
  0x8c   : > { %s1905_s22 = sand.u32 (!%p2125_p8), 1, %s1616_s25  }
  0x8d   : > { %299 = sbr.rel (%p2125_p8) target bundleno = 1774 (0x6ee), region = 48  ;;  %s990_s18 = sshll.u32 (!%p2125_p8), %s1905_s22, 3 }
  0x8e   : > { %s302_s14 = scalar_lea.sflag (!%p2125_p8), [#allocation3], %s1905_s22  ;;  %s1911_s20 = scalar_lea.vmem (!%p2125_p8), [#allocation2], %s990_s18 }
  0x94   : > { %1595 = dma.done.wait (%p1848_p6), %s302_s14, 128  }
  0x95   : > { %1597 = vsyncadd (%p1848_p6), %s302_s14, 4294967168  ;;  %p2126_p4 = scmp.eq.s32.totalorder %s1698_s30, 0 }
  0x97   : > { %1599 = dma.done.wait (%p2126_p4), [#allocation6], 4096   ;;  %p2127_p10 = pmov %p2126_p4 }
  0x98   : > { %p2128_p11 = pmov %p2126_p4 }
  0x99   : > { %1601 = vsyncadd (%p2127_p10), [#allocation6], 4294963200 }
  0x9a   : > { %1603 = dma.done.wait (%p2128_p11), [#allocation9], 4096   ;;  %p2129_p1 = pmov %p2126_p4 }
  0x9b   : > { %v1633_v0 = vmov 0.0|0.0   ;;  %vm1634_vm0 = vmmov 0   ;;  %v1635_v1 = vmov 0.0   ;;  %v355_v2 = vld [vmem:[#allocation5] sm:$0xff]  ;;  %v356_v3 = vld [vmem:[#allocation5 + $0x8] sm:$0xff]  ;;  %v357_v4 = vld [vmem:[#allocation5 + $0x10] sm:$0xff]  ;;  %v371_v27 = vlaneseq }
  0x9c   : > { %1605 = vsyncadd (%p2129_p1), [#allocation9], 4294963200  ;;  %1210 = vmatprep.subr.bf16.mxu0 %v1633_v0  ;;  %1102 = vmatprep.mubr.msk.f32.mxu0 %vm1634_vm0, %v1635_v1  ;;  %v1211_v5 = vpack.c.bf16 %v356_v3, %v355_v2  ;;  %v358_v6 = vld [vmem:[#allocation5 + $0x18] sm:$0xff]  ;;  %v359_v8 = vld [vmem:[#allocation5 + $0x20] sm:$0xff]  ;;  %s999_s11 = sshll.u32 %s1698_s30, 7  ;;  %s351_s29 = scalar_lea.vmem [#allocation11], %s990_s18 }
  0x9d   : > { %1234 = vmatprep.subr.bf16.mxu1 %v1633_v0  ;;  %1137 = vmatprep.mubr.msk.f32.mxu1 %vm1634_vm0, %v1635_v1  ;;  %v1214_v7 = vpack.c.bf16 %v358_v6, %v357_v4  ;;  %v360_v9 = vld [vmem:[#allocation5 + $0x28] sm:$0xff]  ;;  %v361_v11 = vld [vmem:[#allocation5 + $0x30] sm:$0xff]  ;;  %v362_v12 = vld [vmem:[#allocation5 + $0x38] sm:$0xff]  ;;  %v1946_v28 = vshrl.u32 %v371_v27, 7  ;;  %s872_s28 = sshll.u32 %s351_s29, 4  ;;  %s2061_s17 = scalar_lea.hbm %s2112_s7, %s999_s11  ;;  %s2063_s28 = int_to_ptr.vmem [resolvable:$true] %s872_s28 }
  0x9e   : > { %1212 = vmatpush3.bf16.msra.mxu0 %v1211_v5  ;;  %v1217_v10 = vpack.c.bf16 %v360_v9, %v359_v8  ;;  %v1220_v13 = vpack.c.bf16 %v362_v12, %v361_v11  ;;  %v363_v14 = vld [vmem:[#allocation5 + $0x40] sm:$0xff]  ;;  %v364_v15 = vld [vmem:[#allocation5 + $0x48] sm:$0xff]  ;;  %v365_v17 = vld [vmem:[#allocation5 + $0x50] sm:$0xff]  ;;  %s859_s30 = scalar_lea.sflag [#allocation4], %s1905_s22  ;;  %s1550_s14 = scalar_lea.vmem %s2063_s28, 128 }
  0x9f   : > { %1213 = vmatprep.subr.bf16.mxu0 %v1633_v0  ;;  %v1223_v16 = vpack.c.bf16 %v364_v15, %v363_v14  ;;  %v366_v18 = vld [vmem:[#allocation5 + $0x58] sm:$0xff]  ;;  %v367_v20 = vld [vmem:[#allocation5 + $0x60] sm:$0xff]  ;;  %v368_v21 = vld [vmem:[#allocation5 + $0x68] sm:$0xff]  ;;  %v373_v29 = vsub.s32 0, %v1946_v28  ;;  %v461_v6 = vsub.s32 1, %v1946_v28  ;;  %p1551_p6 = scmp.ne.s32.totalorder %s2063_s28, %s1550_s14  ;;  %p2130_p5 = scmp.ne.s32.totalorder %s2122_s9, 0 }
  0xa0   : > { %v1226_v19 = vpack.c.bf16 %v366_v18, %v365_v17  ;;  %v1229_v22 = vpack.c.bf16 %v368_v21, %v367_v20  ;;  %v369_v23 = vld [vmem:[#allocation5 + $0x70] sm:$0xff]  ;;  %v370_v24 = vld [vmem:[#allocation5 + $0x78] sm:$0xff]  ;;  %v472_v36 = vld [vmem:[#allocation7] sm:$0xff]  ;;  %v490_v18 = vsub.s32 3, %v1946_v28  ;;  %s1636_s18 = smov [#allocation11]  }
  0xa1   : > { %v1232_v25 = vpack.c.bf16 %v370_v24, %v369_v23  ;;  %v1939_v26 = vld [vmem:[%s1911_s20] sm:$0xff]  ;;  %v473_v37 = vld [vmem:[#allocation7 + $0x8] sm:$0xff]  ;;  %v476_v42 = vld [vmem:[#allocation7 + $0x20] sm:$0xff]  ;;  %p1552_p7 = pnand %p1551_p6, %p2130_p5  ;;  %s1554_s20 = sshll.u32 %s1636_s18, 4  ;;  %s1555_s20 = int_to_ptr.vmem [resolvable:$false] %s1554_s20 }
  0xa2   : > { %1215 = vmatpush3.bf16.msra.mxu0 %v1214_v7  ;;  %v1952_v30 = vld [vmem:[%s2110_s5] sm:$0xff]  ;;  %v1235_v38 = vpack.c.bf16 %v473_v37, %v472_v36  ;;  %v475_v40 = vld [vmem:[#allocation7 + $0x18] sm:$0xff]  ;;  %v477_v43 = vld [vmem:[#allocation7 + $0x28] sm:$0xff]  ;;  %v466_v7 = vsub.s32 2, %v1946_v28  ;;  %s1556_s8 = scalar_lea.vmem %s1555_s20, 256  ;;  %p1557_p12 = scmp.lt.s32.totalorder %s2063_s28, %s1555_s20 }
  0xa3   : > { %1216 = vmatprep.subr.bf16.mxu0 %v1633_v0  ;;  %v374_v31 = vrot.slane %v1952_v30, %v373_v29  ;;  %v474_v39 = vld [vmem:[#allocation7 + $0x10] sm:$0xff]  ;;  %v1241_v44 = vpack.c.bf16 %v477_v43, %v476_v42  ;;  %v479_v46 = vld [vmem:[#allocation7 + $0x38] sm:$0xff]  ;;  %v480_v48 = vld [vmem:[#allocation7 + $0x40] sm:$0xff]  ;;  %v462_v9 = vrot.slane %v1952_v30, %v461_v6  ;;  %p1553_p9 = pneg %p1552_p7  ;;  %p1558_p3 = scmp.lt.s32.totalorder %s1556_s8, %s1550_s14 }
  0xa4   : > { %1236 = vmatpush3.bf16.msra.mxu1 %v1235_v38  ;;  %v1238_v41 = vpack.c.bf16 %v475_v40, %v474_v39  ;;  %v478_v45 = vld [vmem:[#allocation7 + $0x30] sm:$0xff]  ;;  %v481_v49 = vld [vmem:[#allocation7 + $0x48] sm:$0xff]  ;;  %v483_v52 = vld [vmem:[#allocation7 + $0x58] sm:$0xff]  ;;  %v467_v12 = vrot.slane %v1952_v30, %v466_v7 }
  0xa5   : > { %1237 = vmatprep.subr.bf16.mxu1 %v1633_v0  ;;  %v1244_v47 = vpack.c.bf16 %v479_v46, %v478_v45  ;;  %v1247_v50 = vpack.c.bf16 %v481_v49, %v480_v48  ;;  %v482_v51 = vld [vmem:[#allocation7 + $0x50] sm:$0xff]  ;;  %v484_v54 = vld [vmem:[#allocation7 + $0x60] sm:$0xff]  ;;  %v485_v55 = vld [vmem:[#allocation7 + $0x68] sm:$0xff]  ;;  %p1559_p13 = por %p1558_p3, %p1557_p12 }
  0xa6   : > { %1218 = vmatpush3.bf16.msra.mxu0 %v1217_v10  ;;  %v1250_v53 = vpack.c.bf16 %v483_v52, %v482_v51  ;;  %v1253_v56 = vpack.c.bf16 %v485_v55, %v484_v54  ;;  %v486_v57 = vld [vmem:[#allocation7 + $0x70] sm:$0xff]  ;;  %v487_v58 = vld [vmem:[#allocation7 + $0x78] sm:$0xff]  ;;  %v589_v24 = vld [vmem:[#allocation8] sm:$0xff] }
  0xa7   : > { %1219 = vmatprep.subr.bf16.mxu0 %v1633_v0  ;;  %v1256_v59 = vpack.c.bf16 %v487_v58, %v486_v57  ;;  %v595_v37 = vld [vmem:[#allocation8 + $0x30] sm:$0xff]  ;;  %v596_v38 = vld [vmem:[#allocation8 + $0x38] sm:$0xff]  ;;  %v597_v40 = vld [vmem:[#allocation8 + $0x40] sm:$0xff]  ;;  %p1560_p0 = pnand %p1559_p13, %p1553_p9 }
  0xa8   : > { %1239 = vmatpush3.bf16.msra.mxu1 %v1238_v41  ;;  %v1268_v39 = vpack.c.bf16 %v596_v38, %v595_v37  ;;  %v598_v41 = vld [vmem:[#allocation8 + $0x48] sm:$0xff]  ;;  %v599_v43 = vld [vmem:[#allocation8 + $0x50] sm:$0xff]  ;;  %v601_v46 = vld [vmem:[#allocation8 + $0x60] sm:$0xff] }
  0xa9   : > { %1240 = vmatprep.subr.bf16.mxu1 %v1633_v0  ;;  %v1271_v42 = vpack.c.bf16 %v598_v41, %v597_v40  ;;  %v603_v49 = vld [vmem:[#allocation8 + $0x70] sm:$0xff]  ;;  %v744_v38 = vld [vmem:[#allocation10 + $0x40] sm:$0xff] }
  0xaa   : > { %1221 = vmatpush3.bf16.msra.mxu0 %v1220_v13  ;;  %v746_v41 = vld [vmem:[#allocation10 + $0x50] sm:$0xff] }
  0xab   : > { %1222 = vmatprep.subr.bf16.mxu0 %v1633_v0 }
  0xac   : > { %1242 = vmatpush3.bf16.msra.mxu1 %v1241_v44  ;;  %v600_v44 = vld [vmem:[#allocation8 + $0x58] sm:$0xff] }
  0xad   : > { %1243 = vmatprep.subr.bf16.mxu1 %v1633_v0  ;;  %v1274_v45 = vpack.c.bf16 %v600_v44, %v599_v43  ;;  %v748_v43 = vld [vmem:[#allocation10 + $0x60] sm:$0xff] }
  0xae   : > { %1224 = vmatpush3.bf16.msra.mxu0 %v1223_v16 }
  0xaf   : > { %1225 = vmatprep.subr.bf16.mxu0 %v1633_v0 }
  0xb0   : > { %1245 = vmatpush3.bf16.msra.mxu1 %v1244_v47  ;;  %v602_v47 = vld [vmem:[#allocation8 + $0x68] sm:$0xff] }
  0xb1   : > { %1246 = vmatprep.subr.bf16.mxu1 %v1633_v0  ;;  %v1277_v48 = vpack.c.bf16 %v602_v47, %v601_v46  ;;  %v750_v47 = vld [vmem:[#allocation10 + $0x70] sm:$0xff] }
  0xb2   : > { %1227 = vmatpush3.bf16.msra.mxu0 %v1226_v19  ;;  %v491_v19 = vrot.slane %v1952_v30, %v490_v18 }
  0xb3   : > { %1228 = vmatprep.subr.bf16.mxu0 %v1633_v0 }
  0xb4   : > { %1248 = vmatpush3.bf16.msra.mxu1 %v1247_v50  ;;  %v604_v50 = vld [vmem:[#allocation8 + $0x78] sm:$0xff] }
  0xb5   : > { %1249 = vmatprep.subr.bf16.mxu1 %v1633_v0  ;;  %v1280_v51 = vpack.c.bf16 %v604_v50, %v603_v49 }
  0xb6   : > { %1230 = vmatpush3.bf16.msra.mxu0 %v1229_v22 }
  0xb7   : > { %1231 = vmatprep.subr.bf16.mxu0 %v1633_v0 }
  0xb8   : > { %1251 = vmatpush3.bf16.msra.mxu1 %v1250_v53 }
  0xb9   : > { %1252 = vmatprep.subr.bf16.mxu1 %v1633_v0 }
  0xba   : > { %1233 = vmatpush3.bf16.msra.mxu0 %v1232_v25  ;;  %v590_v25 = vld [vmem:[#allocation8 + $0x8] sm:$0xff] }
  0xbb   : > { %1258 = vmatprep.subr.bf16.mxu0 %v1633_v0 }
  0xbc   : > { %1254 = vmatpush3.bf16.msra.mxu1 %v1253_v56 }
  0xbd   : > { %1103 = vmatmul.mubr.f32.vlgmr.msra.gmra.mrb[0].mxu0 %v1939_v26  ;;  %1255 = vmatprep.subr.bf16.mxu1 %v1633_v0 }
  0xbe   : > { %1172 = vmatprep.mubr.msk.f32.mxu0 %vm1634_vm0, %v1635_v1 }
  0xc0   : > { %1257 = vmatpush3.bf16.msra.mxu1 %v1256_v59 }
  0xc1   : > { %1282 = vmatprep.subr.bf16.mxu1 %v1633_v0 }
 0x190   : > { %v441_v32 = vpop.f32.mrb[0].mxu0 }
 0x191   : > { %v442_v33 = vadd.f32 %v441_v32, %v374_v31  ;;  %v1104_v34 = vpop.f32.mrb[1].mxu0  ;;  %v591_v31 = vld [vmem:[#allocation8 + $0x10] sm:$0xff]  ;;  %v592_v32 = vld [vmem:[#allocation8 + $0x18] sm:$0xff] }
 0x192   : > { %v593_v34 = vld [vmem:[#allocation8 + $0x20] sm:$0xff] }
 0x193   : > { %445 = vadd.xlane.f32.xlu0 %v442_v33  ;;  %v448_v35 = vmul.f32 %v442_v33, %v442_v33 }
 0x197   : > { %449 = vadd.xlane.f32.xlu0 %v448_v35  ;;  %v594_v35 = vld [vmem:[#allocation8 + $0x28] sm:$0xff] }
 0x198   : > { %v1265_v36 = vpack.c.bf16 %v594_v35, %v593_v34  ;;  %v742_v35 = vld [vmem:[#allocation10 + $0x30] sm:$0xff] }
 0x220   : > { %v446_v60 = vpop.xlane.xlu0 %445 }
 0x221   : > { %v447_v61 = vmul.f32 0.010416667, %v446_v60  ;;  %v578_v60 = vsub.s32 4, %v1946_v28 }
 0x223   : > { %v452_v63 = vmul.f32 %v447_v61, %v447_v61  ;;  %v457_v8 = vsub.f32 %v442_v33, %v447_v61  ;;  %v1262_v33 = vpack.c.bf16 %v592_v32, %v591_v31  ;;  %v583_v61 = vsub.s32 5, %v1946_v28  ;;  %v740_v32 = vld [vmem:[#allocation10 + $0x20] sm:$0xff] }
 0x224   : > { %v450_v62 = vpop.xlane.xlu0 %449 }
 0x225   : > { %v451_v2 = vmul.f32 0.010416667, %v450_v62 }
 0x227   : > { %v453_v3 = vsub.f32 %v451_v2, %v452_v63  ;;  %v579_v63 = vrot.slane %v1952_v30, %v578_v60 }
 0x229   : > { %v454_v4 = vmax.f32 %v453_v3, 0.0 }
 0x22b   : > { %v455_v5 = vadd.f32 1e-05, %v454_v4  ;;  %v584_v4 = vrot.slane %v1952_v30, %v583_v61 }
 0x22d   : > { %1398 = vrsqrt.f32 %v455_v5 }
 0x237   : > { %v1399_v10 = vpop.eup %1398 }
 0x238   : > { %v458_v11 = vmul.f32 %v1399_v10, %v457_v8 }
 0x23a   : > { %v463_v13 = vmul.f32 %v462_v9, %v458_v11 }
 0x23c   : > { %v468_v14 = vadd.f32 %v467_v12, %v463_v13  ;;  %v680_v12 = vand.u32 127, %v371_v27  ;;  %v2003_v13 = vld [vmem:[%s2111_s6] sm:$0xff] }
 0x23e   : > { %v469_v15 = vmul.f32 0.2, %v468_v14  ;;  %vm681_vm1 = vcmp.lt.s32.totalorder %v680_v12, 32  ;;  %vm684_vm2 = vcmp.ge.s32.totalorder %v680_v12, 32 }
 0x240   : > { %v470_v16 = vmax.f32 %v468_v14, %v469_v15  ;;  %v608_v14 = vrot.slane %v2003_v13, %v373_v29  ;;  %v2009_v15 = vsel %vm684_vm2, 1.0, %v1635_v1 }
 0x242   : > { %v1974_v17 = vadd.f32 %v470_v16, %v1939_v26  ;;  %v1259_v26 = vpack.c.bf16 %v590_v25, %v589_v24  ;;  %v2012_v16 = vsel %vm681_vm1, 1.0, %v1635_v1  ;;  %v738_v25 = vld [vmem:[#allocation10 + $0x10] sm:$0xff] }
 0x244   : > { %1138 = vmatmul.mubr.f32.vlgmr.msra.gmra.mrb[0].mxu1 %v1974_v17  ;;  %1260 = vmatpush3.bf16.msra.mxu0 %v1259_v26  ;;  %v739_v26 = vld [vmem:[#allocation10 + $0x18] sm:$0xff] }
 0x245   : > { %1207 = vmatprep.mubr.msk.f32.mxu1 %vm1634_vm0, %v1635_v1  ;;  %1261 = vmatprep.subr.bf16.mxu0 %v1633_v0  ;;  %v736_v1 = vld [vmem:[#allocation10] sm:$0xff]  ;;  %v1286_v31 = vpack.c.bf16 %v739_v26, %v738_v25 }
 0x248   : > { %1263 = vmatpush3.bf16.msra.mxu0 %v1262_v33  ;;  %v741_v33 = vld [vmem:[#allocation10 + $0x28] sm:$0xff] }
 0x249   : > { %1264 = vmatprep.subr.bf16.mxu0 %v1633_v0  ;;  %v1289_v34 = vpack.c.bf16 %v741_v33, %v740_v32 }
 0x24c   : > { %1266 = vmatpush3.bf16.msra.mxu0 %v1265_v36  ;;  %v743_v36 = vld [vmem:[#allocation10 + $0x38] sm:$0xff] }
 0x24d   : > { %1267 = vmatprep.subr.bf16.mxu0 %v1633_v0  ;;  %v1292_v37 = vpack.c.bf16 %v743_v36, %v742_v35 }
 0x250   : > { %1269 = vmatpush3.bf16.msra.mxu0 %v1268_v39  ;;  %v745_v39 = vld [vmem:[#allocation10 + $0x48] sm:$0xff] }
 0x251   : > { %1270 = vmatprep.subr.bf16.mxu0 %v1633_v0  ;;  %v1295_v40 = vpack.c.bf16 %v745_v39, %v744_v38 }
 0x254   : > { %1272 = vmatpush3.bf16.msra.mxu0 %v1271_v42  ;;  %v747_v42 = vld [vmem:[#allocation10 + $0x58] sm:$0xff] }
 0x255   : > { %1273 = vmatprep.subr.bf16.mxu0 %v1633_v0  ;;  %v1298_v44 = vpack.c.bf16 %v747_v42, %v746_v41 }
 0x258   : > { %1275 = vmatpush3.bf16.msra.mxu0 %v1274_v45  ;;  %v749_v45 = vld [vmem:[#allocation10 + $0x68] sm:$0xff] }
 0x259   : > { %1276 = vmatprep.subr.bf16.mxu0 %v1633_v0  ;;  %v1301_v46 = vpack.c.bf16 %v749_v45, %v748_v43  ;;  %v850_v43 = vrot.slane %v2003_v13, %v583_v61 }
 0x25c   : > { %1278 = vmatpush3.bf16.msra.mxu0 %v1277_v48  ;;  %v751_v48 = vld [vmem:[#allocation10 + $0x78] sm:$0xff] }
 0x25d   : > { %1279 = vmatprep.subr.bf16.mxu0 %v1633_v0  ;;  %v1304_v49 = vpack.c.bf16 %v751_v48, %v750_v47 }
 0x260   : > { %1281 = vmatpush3.bf16.msra.mxu0 %v1280_v51 }
 0x317   : > { %v558_v20 = vpop.f32.mrb[0].mxu1 }
 0x318   : > { %v559_v21 = vadd.f32 %v558_v20, %v491_v19  ;;  %v1139_v22 = vpop.f32.mrb[1].mxu1 }
 0x31a   : > { %562 = vadd.xlane.f32.xlu1 %v559_v21  ;;  %v565_v23 = vmul.f32 %v559_v21, %v559_v21 }
 0x31e   : > { %566 = vadd.xlane.f32.xlu1 %v565_v23  ;;  %v737_v23 = vld [vmem:[#allocation10 + $0x8] sm:$0xff] }
 0x31f   : > { %v1283_v24 = vpack.c.bf16 %v737_v23, %v736_v1 }
 0x321   : > { %1284 = vmatpush3.bf16.msra.mxu1 %v1283_v24  ;;  %v755_v24 = vrot.slane %v2003_v13, %v490_v18 }
 0x322   : > { %1285 = vmatprep.subr.bf16.mxu1 %v1633_v0 }
 0x325   : > { %1287 = vmatpush3.bf16.msra.mxu1 %v1286_v31 }
 0x326   : > { %1288 = vmatprep.subr.bf16.mxu1 %v1633_v0 }
 0x329   : > { %1290 = vmatpush3.bf16.msra.mxu1 %v1289_v34 }
 0x32a   : > { %1291 = vmatprep.subr.bf16.mxu1 %v1633_v0 }
 0x32d   : > { %1293 = vmatpush3.bf16.msra.mxu1 %v1292_v37 }
 0x32e   : > { %1294 = vmatprep.subr.bf16.mxu1 %v1633_v0 }
 0x331   : > { %1296 = vmatpush3.bf16.msra.mxu1 %v1295_v40  ;;  %v845_v40 = vrot.slane %v2003_v13, %v578_v60 }
 0x332   : > { %1297 = vmatprep.subr.bf16.mxu1 %v1633_v0 }
 0x335   : > { %1299 = vmatpush3.bf16.msra.mxu1 %v1298_v44 }
 0x336   : > { %1300 = vmatprep.subr.bf16.mxu1 %v1633_v0 }
 0x339   : > { %1302 = vmatpush3.bf16.msra.mxu1 %v1301_v46 }
 0x33a   : > { %1303 = vmatprep.subr.bf16.mxu1 %v1633_v0 }
 0x33d   : > { %1305 = vmatpush3.bf16.msra.mxu1 %v1304_v49 }
 0x3a7   : > { %v563_v52 = vpop.xlane.xlu1 %562 }
 0x3a8   : > { %v564_v53 = vmul.f32 0.010416667, %v563_v52 }
 0x3aa   : > { %v569_v55 = vmul.f32 %v564_v53, %v564_v53  ;;  %v574_v62 = vsub.f32 %v559_v21, %v564_v53 }
 0x3ab   : > { %v567_v54 = vpop.xlane.xlu1 %566 }
 0x3ac   : > { %v568_v56 = vmul.f32 0.010416667, %v567_v54 }
 0x3ae   : > { %v570_v57 = vsub.f32 %v568_v56, %v569_v55 }
 0x3b0   : > { %v571_v58 = vmax.f32 %v570_v57, 0.0 }
 0x3b2   : > { %v572_v59 = vadd.f32 1e-05, %v571_v58 }
 0x3b4   : > { %1400 = vrsqrt.f32 %v572_v59 }
 0x3be   : > { %v1401_v2 = vpop.eup %1400 }
 0x3bf   : > { %v575_v3 = vmul.f32 %v1401_v2, %v574_v62 }
 0x3c1   : > { %v580_v5 = vmul.f32 %v579_v63, %v575_v3 }
 0x3c3   : > { %v585_v8 = vadd.f32 %v584_v4, %v580_v5 }
 0x3c5   : > { %v586_v9 = vmul.f32 0.2, %v585_v8 }
 0x3c7   : > { %v587_v10 = vmax.f32 %v585_v8, %v586_v9 }
 0x3c9   : > { %v588_v11 = vadd.f32 %v587_v10, %v1974_v17 }
 0x3cb   : > { %1173 = vmatmul.mubr.f32.vlgmr.msra.gmra.mrb[2].mxu0 %v588_v11 }
 0x49e   : > { %v675_v30 = vpop.f32.mrb[2].mxu0 }
 0x49f   : > { %v2014_v17 = vadd.f32 %v675_v30, %v608_v14  ;;  %v1174_v27 = vpop.f32.mrb[3].mxu0 }
 0x4a1   : > { %v696_v19 = vmul.f32 %v2009_v15, %v2014_v17  ;;  %v689_v20 = vmul.f32 %v2012_v16, %v2014_v17  ;;  %v692_v29 = vmul.f32 %v2014_v17, %v2014_v17 }
 0x4a3   : > { %697 = vadd.xlane.f32.xlu1 %v696_v19  ;;  %690 = vadd.xlane.f32.xlu0 %v689_v20  ;;  %v699_v21 = vmul.f32 %v2009_v15, %v692_v29  ;;  %v693_v22 = vmul.f32 %v2012_v16, %v692_v29  ;;  %v727_v19 = vrot.slane %v2003_v13, %v461_v6 }
 0x4a4   : > { %v732_v29 = vrot.slane %v2003_v13, %v466_v7 }
 0x4a7   : > { %700 = vadd.xlane.f32.xlu1 %v699_v21  ;;  %694 = vadd.xlane.f32.xlu0 %v693_v22 }
 0x530   : > { %v698_v50 = vpop.xlane.xlu1 %697  ;;  %v691_v51 = vpop.xlane.xlu0 %690 }
 0x531   : > { %v703_v52 = vmul.f32 0.010416667, %v698_v50  ;;  %v702_v53 = vmul.f32 0.03125, %v691_v51 }
 0x533   : > { %v709_v56 = vmul.f32 %v703_v52, %v703_v52  ;;  %v705_v57 = vmul.f32 %v702_v53, %v702_v53  ;;  %v717_v0 = vmul.f32 %v2009_v15, %v703_v52  ;;  %v716_v8 = vmul.f32 %v2012_v16, %v702_v53 }
 0x534   : > { %v701_v54 = vpop.xlane.xlu1 %700  ;;  %v695_v55 = vpop.xlane.xlu0 %694 }
 0x535   : > { %v708_v58 = vmul.f32 0.010416667, %v701_v54  ;;  %v704_v59 = vmul.f32 0.03125, %v695_v55  ;;  %v718_v10 = vadd.f32 %v717_v0, %v716_v8 }
 0x537   : > { %v710_v62 = vsub.f32 %v708_v58, %v709_v56  ;;  %v706_v63 = vsub.f32 %v704_v59, %v705_v57  ;;  %v722_v30 = vsub.f32 %v2014_v17, %v718_v10 }
 0x539   : > { %v711_v2 = vmax.f32 %v710_v62, 0.0  ;;  %v707_v3 = vmax.f32 %v706_v63, 0.0 }
 0x53b   : > { %v714_v4 = vadd.f32 1e-05, %v711_v2  ;;  %v712_v5 = vadd.f32 1e-05, %v707_v3 }
 0x53d   : > { %1402 = vrsqrt.f32 %v714_v4 }
 0x53e   : > { %1404 = vrsqrt.f32 %v712_v5 }
 0x547   : > { %v1403_v9 = vpop.eup %1402 }
 0x548   : > { %v1405_v11 = vpop.eup %1404  ;;  %v720_v12 = vmul.f32 %v1403_v9, %v2009_v15 }
 0x549   : > { %v719_v14 = vmul.f32 %v1405_v11, %v2012_v16 }
 0x54b   : > { %v721_v27 = vadd.f32 %v720_v12, %v719_v14 }
 0x54d   : > { %v723_v20 = vmul.f32 %v722_v30, %v721_v27 }
 0x54f   : > { %v728_v21 = vmul.f32 %v727_v19, %v723_v20 }
 0x551   : > { %v733_v22 = vadd.f32 %v732_v29, %v728_v21 }
 0x553   : > { %v734_v1 = vmul.f32 0.2, %v733_v22 }
 0x555   : > { %v735_v23 = vmax.f32 %v733_v22, %v734_v1 }
 0x557   : > { %1208 = vmatmul.mubr.f32.vlgmr.msra.gmra.mrb[2].mxu1 %v735_v23 }
 0x62a   : > { %v822_v17 = vpop.f32.mrb[2].mxu1 }
 0x62b   : > { %v823_v25 = vadd.f32 %v822_v17, %v755_v24  ;;  %v1209_v26 = vpop.f32.mrb[3].mxu1 }
 0x62d   : > { %v826_v31 = vmul.f32 %v2012_v16, %v823_v25  ;;  %v829_v6 = vmul.f32 %v823_v25, %v823_v25  ;;  %v855_v48 = vmul.f32 %v2009_v15, %v823_v25 }
 0x62f   : > { %827 = vadd.xlane.f32.xlu0 %v826_v31  ;;  %v830_v32 = vmul.f32 %v2012_v16, %v829_v6 }
 0x631   : > { %831 = vadd.xlane.f32.xlu1 %v830_v32 }
 0x6bc   : > { %v828_v7 = vpop.xlane.xlu0 %827 }
 0x6bd   : > { %v833_v33 = vmul.f32 0.03125, %v828_v7 }
 0x6be   : > { %v832_v34 = vpop.xlane.xlu1 %831 }
 0x6bf   : > { %v835_v35 = vmul.f32 %v833_v33, %v833_v33  ;;  %v834_v36 = vmul.f32 0.03125, %v832_v34  ;;  %v840_v39 = vsub.f32 %v823_v25, %v833_v33 }
 0x6c1   : > { %v836_v37 = vsub.f32 %v834_v36, %v835_v35 }
 0x6c3   : > { %v837_v38 = vmax.f32 %v836_v37, 0.0 }
 0x6c5   : > { %v838_v18 = vadd.f32 1e-05, %v837_v38 }
 0x6c7   : > { %1406 = vrsqrt.f32 %v838_v18 }
 0x6d1   : > { %v1407_v41 = vpop.eup %1406 }
 0x6d2   : > { %v841_v42 = vmul.f32 %v1407_v41, %v840_v39 }
 0x6d4   : > { %v846_v44 = vmul.f32 %v845_v40, %v841_v42 }
 0x6d6   : > { %v851_v45 = vadd.f32 %v850_v43, %v846_v44 }
 0x6d8   : > { %v852_v46 = vmul.f32 0.2, %v851_v45 }
 0x6da   : > { %v853_v47 = vmax.f32 %v851_v45, %v852_v46 }
 0x6dc   : > { %v854_v60 = vmul.f32 %v2012_v16, %v853_v47 }
 0x6de   : > { %v856_v49 = vadd.f32 %v855_v48, %v854_v60 }
 0x6e0   : > { %857 = vst [vmem:[%s351_s29] sm:$0xff] %v856_v49 }
 0x6e1   : > { %1563 = shalt.err (!%p1560_p0)
}
 0x6e2   : > { %s1564_s22 = scalar_lea.hbm %s2061_s17, 128  ;;  %s1568_s21 = scalar_lea.hbm %s2112_s7, 256 }
 0x6e3   : > { %p1565_p2 = scmp.ne.s32.totalorder %s2061_s17, %s1564_s22  ;;  %p1569_p10 = scmp.lt.u32.totalorder %s2061_s17, %s2112_s7 }
 0x6e4   : > { %p1570_p11 = scmp.lt.u32.totalorder %s1568_s21, %s1564_s22  ;;  %p1572_p6 = scmp.lt.u32.totalorder %s1564_s22, %s2061_s17 }
 0x6e5   : > { %p1566_p8 = pnand %p1565_p2, %p2130_p5 }
 0x6e6   : > { %p1571_p1 = por %p1570_p11, %p1569_p10 }
 0x6e7   : > { %p1567_p4 = pneg %p1566_p8 }
 0x6e8   : > { %p1573_p7 = por %p1572_p6, %p1571_p1 }
 0x6ea   : > { %p1574_p9 = pnand %p1573_p7, %p1567_p4 }
 0x6ec   : > { %1577 = shalt.err (!%p1574_p9)
}
 0x6ed   : > { %1324 = dma.vmem_to_hbm [thread:$0]  (%p2130_p5), %s2063_s28, 128, %s2061_s17, %s859_s30  }
 0x6ee PF: > { %s884_s10 = sand.u32 1, %s1612_s24   ;;  %p2131_p12 = scmp.ne.s32.totalorder %s2123_s15, 0 }
 0x6ef   : > { %p2132_p3 = scmp.ge.s32.totalorder %s1624_s27, 2  ;;  %s885_s16 = scalar_lea.sflag [#allocation4], %s884_s10 }
 0x6f1   : > { %p1344_p13 = pnand %p2132_p3, %p2131_p12 }
 0x6f3   : > { %1607 = dma.done.wait (!%p1344_p13), %s885_s16, 128  }
 0x6f4   : > { %1609 = vsyncadd (!%p1344_p13), %s885_s16, 4294967168  ;;  %p22_p0 = scmp.ge.s32.totalorder %s1829_s19, 4   ;;  %s2133_s24 = smov %s1616_s25 }
 0x6f5   : > { %s2134_s25 = smov %s1620_s26  ;;  %s2135_s26 = smov %s1840_s12 }
 0x6f6   : > { %s2136_s27 = smov %s1829_s19  ;;  %24 = sbr.rel (!%p22_p0) target bundleno = 7 (0x7), region = 109 }
 0x6fd   :  { %890 = vsyncpa [#allocation3], 1 }
 0x6fe   :  { %892 = vsyncpa [#allocation3 + $0x1], 1 }
 0x6ff   :  { %893 = vsyncpa [#allocation6], 1 }
 0x700   :  { %894 = vsyncpa [#allocation9], 1 }
 0x701   :  { %895 = vsyncpa [#allocation4], 1 }
 0x702   :  { %897 = vsyncpa [#allocation4 + $0x1], 1 }

</bundles_post_ra>
